<compile_context>
chip_gen: v5e
topology: v5e:2x2
jax: 0.10.0
libtpu: 0.0.40
codegen_flags: <defaults>
</compile_context>

<pallas_src>
import jax
import jax.numpy as jnp
from jax import lax
from jax.experimental import pallas as pl
from jax.experimental.pallas import tpu as pltpu


def _round_up(n: int, m: int) -> int:
    return ((n + m - 1) // m) * m


_NT = (((1,), (1,)), ((), ()))  # contract the last dim of both operands


def _ffn_kernel(x_ref, w1_ref, w2_ref, w3_ref, o_ref, acc_ref):
    # x_ref  : (tm, emb_p)    row tile of the flattened input
    # w1_ref : (th, emb_p)    fc1 weight tile (native (hidden, emb) layout)
    # w2_ref : (th, emb_p)    fc2 weight tile
    # w3_ref : (emb_p, th)    fc3 weight tile (native (emb, hidden) layout)
    # o_ref  : (tm, emb_p)
    # acc_ref: (tm, emb_p) f32 accumulator over hidden tiles
    j = pl.program_id(1)

    @pl.when(j == 0)
    def _():
        acc_ref[...] = jnp.zeros_like(acc_ref)

    x = x_ref[...]
    h1 = lax.dot_general(x, w1_ref[...], _NT, preferred_element_type=jnp.float32)
    h2 = lax.dot_general(x, w2_ref[...], _NT, preferred_element_type=jnp.float32)
    # SwiGLU gate in f32; fed to fc3 in the layer dtype (like the PyTorch module).
    g = (h1 * jax.nn.sigmoid(h1)) * h2
    g = g.astype(x_ref.dtype)
    acc_ref[...] += lax.dot_general(g, w3_ref[...], _NT,
                                    preferred_element_type=jnp.float32)

    @pl.when(j == pl.num_programs(1) - 1)
    def _():
        o_ref[...] = acc_ref[...].astype(o_ref.dtype)


def feed_forward(x, w1, w2, w3, *, tm=512):
    """SwiGLU FFN: fc3(silu(fc1(x)) * fc2(x)).

    x: (..., emb_dim); w1/w2: (hidden_dim, emb_dim); w3: (emb_dim, hidden_dim).
    """
    emb_dim = x.shape[-1]
    hidden_dim = w1.shape[0]
    assert w1.shape == (hidden_dim, emb_dim)
    assert w2.shape == (hidden_dim, emb_dim)
    assert w3.shape == (emb_dim, hidden_dim)

    lead_shape = x.shape[:-1]
    x2d = x.reshape(-1, emb_dim)
    M = x2d.shape[0]
    dt = x.dtype
    db = jnp.dtype(dt).itemsize

    # Lane-dense targets: last dim multiples of 128, rows multiples of 8.
    emb_p = _round_up(emb_dim, 128)
    hid_p = _round_up(hidden_dim, 128)
    M8 = _round_up(max(M, 1), 8)

    # ---- Generation-aware VMEM budget --------------------------------------
    try:
        vmem_cap = int(pltpu.get_tpu_info().vmem_capacity_bytes)
    except Exception:
        vmem_cap = 64 * 1024 * 1024  # conservative (v7x per-core VMEM)
    # Data budget leaves slack for compiler scratch; limit always >= needed.
    budget = max(32 * 1024 * 1024, vmem_cap - 24 * 1024 * 1024)

    def vmem_needed(tm_e, th_e):
        x_b = 2 * tm_e * emb_p * db        # double-buffered input tile
        o_b = 2 * tm_e * emb_p * db        # double-buffered output tile
        w_b = 2 * 3 * th_e * emb_p * db    # 3 weight tiles, double-buffered
        acc_b = tm_e * emb_p * 4           # f32 accumulator scratch
        mid_b = 3 * tm_e * th_e * 4 + tm_e * th_e * db + tm_e * emb_p * 4
        return x_b + o_b + w_b + acc_b + mid_b

    # ---- Tile selection: keep row tile and hidden tile as big as fits ------
    tm_eff = max(8, (min(int(tm), M8) // 8) * 8)
    th = hid_p
    while vmem_needed(tm_eff, th) > budget:
        if th > 1024:
            th = _round_up(th // 2, 128)
        elif tm_eff > 256:
            tm_eff = max(256, ((tm_eff // 2) // 8) * 8)
        elif th > 128:
            th = _round_up(th // 2, 128)
        elif tm_eff > 8:
            tm_eff = max(8, ((tm_eff // 2) // 8) * 8)
        else:
            break  # minimal configuration; proceed

    hid_tp = _round_up(hid_p, th)          # hidden padded to the hidden tile
    grid_m = pl.cdiv(M8, tm_eff)
    grid_h = hid_tp // th

    needed = vmem_needed(tm_eff, th)
    vmem_limit = int(min(vmem_cap,
                         max(needed + 16 * 1024 * 1024, 32 * 1024 * 1024)))

    # ---- Padding: only materialized when actually required -----------------
    if emb_p != emb_dim or M8 != M:
        x_in = jnp.zeros((M8, emb_p), dt).at[:M, :emb_dim].set(x2d)
    else:
        x_in = x2d

    # In production these weight pads/casts would be done once at param init.
    def _prep_w(w, rows, cols, rows_p, cols_p):
        w = w.astype(dt)
        if rows_p != rows or cols_p != cols:
            w = jnp.zeros((rows_p, cols_p), dt).at[:rows, :cols].set(w)
        return w

    w1p = _prep_w(w1, hidden_dim, emb_dim, hid_tp, emb_p)
    w2p = _prep_w(w2, hidden_dim, emb_dim, hid_tp, emb_p)
    w3p = _prep_w(w3, emb_dim, hidden_dim, emb_p, hid_tp)

    out_pad = pl.pallas_call(
        _ffn_kernel,
        out_shape=jax.ShapeDtypeStruct((M8, emb_p), dt),
        grid_spec=pltpu.PrefetchScalarGridSpec(
            num_scalar_prefetch=0,
            grid=(grid_m, grid_h),
            in_specs=[
                pl.BlockSpec((tm_eff, emb_p), lambda i, j: (i, 0)),
                pl.BlockSpec((th, emb_p), lambda i, j: (j, 0)),
                pl.BlockSpec((th, emb_p), lambda i, j: (j, 0)),
                pl.BlockSpec((emb_p, th), lambda i, j: (0, j)),
            ],
            out_specs=pl.BlockSpec((tm_eff, emb_p), lambda i, j: (i, 0)),
            scratch_shapes=[pltpu.VMEM((tm_eff, emb_p), jnp.float32)],
        ),
        compiler_params=pltpu.CompilerParams(
            dimension_semantics=("parallel", "arbitrary"),
            vmem_limit_bytes=vmem_limit,
        ),
    )(x_in, w1p, w2p, w3p)

    out2d = out_pad[:M, :emb_dim]
    return out2d.reshape(*lead_shape, emb_dim)


def _reference(x, w1, w2, w3):
    h1 = x @ w1.T
    h2 = x @ w2.T
    return (jax.nn.silu(h1) * h2) @ w3.T


if __name__ == "__main__":
    # Small shapes consistent with the module: (batch, seq, emb_dim), SwiGLU FFN.
    batch, seq, emb_dim, hidden_dim = 2, 8, 32, 64

    key = jax.random.PRNGKey(0)
    kx, k1, k2, k3 = jax.random.split(key, 4)

    x = jax.random.normal(kx, (batch, seq, emb_dim), dtype=jnp.float32)
    # PyTorch Linear weight shapes: (out_features, in_features), bias=False.
    b1 = 1.0 / (emb_dim ** 0.5)
    b3 = 1.0 / (hidden_dim ** 0.5)
    w1 = jax.random.uniform(k1, (hidden_dim, emb_dim), minval=-b1, maxval=b1,
                            dtype=jnp.float32)
    w2 = jax.random.uniform(k2, (hidden_dim, emb_dim), minval=-b1, maxval=b1,
                            dtype=jnp.float32)
    w3 = jax.random.uniform(k3, (emb_dim, hidden_dim), minval=-b3, maxval=b3,
                            dtype=jnp.float32)

    out = feed_forward(x, w1, w2, w3)
    out = jax.block_until_ready(out)

    ref = _reference(x, w1, w2, w3)
    assert out.shape == (batch, seq, emb_dim)
    assert jnp.allclose(out, ref, atol=2e-5, rtol=2e-5), "mismatch vs reference"

    print("KERNEL_OK")
</pallas_src>

<mosaic_0001>
module attributes {stable_mosaic.version = 11 : i64} {
  func.func @_ffn_kernel(%arg0: i32, %arg1: i32, %arg2: memref<16x128xf32, #tpu.memory_space<vmem>>, %arg3: memref<128x128xf32, #tpu.memory_space<vmem>>, %arg4: memref<128x128xf32, #tpu.memory_space<vmem>>, %arg5: memref<128x128xf32, #tpu.memory_space<vmem>>, %arg6: memref<16x128xf32, #tpu.memory_space<vmem>>, %arg7: memref<16x128xf32, #tpu.memory_space<vmem>>) attributes {dimension_semantics = [#tpu.dimension_semantics<parallel>, #tpu.dimension_semantics<arbitrary>], iteration_bounds = array<i64: 1, 1>, scalar_prefetch = 0 : i64, scratch_operands = 1 : i64, tpu.core_type = #tpu.core_type<tc>, window_params = [{transform_indices = @transform_0, window_bounds = array<i64: 16, 128>}, {transform_indices = @transform_1, window_bounds = array<i64: 128, 128>}, {transform_indices = @transform_2, window_bounds = array<i64: 128, 128>}, {transform_indices = @transform_3, window_bounds = array<i64: 128, 128>}, {transform_indices = @transform_4, window_bounds = array<i64: 16, 128>}]} {
    %c0_i32 = arith.constant 0 : i32
    %0 = arith.cmpi eq, %arg1, %c0_i32 : i32
    %1 = arith.extui %0 : i1 to i32
    %c0_i32_0 = arith.constant 0 : i32
    %2 = arith.cmpi ne, %1, %c0_i32_0 : i32
    scf.if %2 {
      %cst_17 = arith.constant 0.000000e+00 : f32
      %23 = vector.broadcast %cst_17 : f32 to vector<16x128xf32>
      %c0_18 = arith.constant 0 : index
      %c0_19 = arith.constant 0 : index
      %24 = vector.load %arg7[%c0_18, %c0_19] : memref<16x128xf32, #tpu.memory_space<vmem>>, vector<16x128xf32>
      tpu.vector_store %arg7[%c0_18, %c0_19], %23 {strides = array<i32>} : memref<16x128xf32, #tpu.memory_space<vmem>>, vector<16x128xf32>,
    } else {
    }
    %c0 = arith.constant 0 : index
    %c0_1 = arith.constant 0 : index
    %3 = vector.load %arg2[%c0, %c0_1] : memref<16x128xf32, #tpu.memory_space<vmem>>, vector<16x128xf32>
    %c0_2 = arith.constant 0 : index
    %c0_3 = arith.constant 0 : index
    %4 = vector.load %arg3[%c0_2, %c0_3] : memref<128x128xf32, #tpu.memory_space<vmem>>, vector<128x128xf32>
    %cst = arith.constant dense<0.000000e+00> : vector<16x128xf32>
    %5 = tpu.matmul %3, %4, %cst {dimension_numbers = #tpu.dot_dimension_numbers<[1], [1], [0], [0], [0, 0, 1, 0], [], []>} : vector<16x128xf32>, vector<128x128xf32>, vector<16x128xf32> -> vector<16x128xf32>
    %c0_4 = arith.constant 0 : index
    %c0_5 = arith.constant 0 : index
    %6 = vector.load %arg4[%c0_4, %c0_5] : memref<128x128xf32, #tpu.memory_space<vmem>>, vector<128x128xf32>
    %cst_6 = arith.constant dense<0.000000e+00> : vector<16x128xf32>
    %7 = tpu.matmul %3, %6, %cst_6 {dimension_numbers = #tpu.dot_dimension_numbers<[1], [1], [0], [0], [0, 0, 1, 0], [], []>} : vector<16x128xf32>, vector<128x128xf32>, vector<16x128xf32> -> vector<16x128xf32>
    %8 = arith.negf %5 : vector<16x128xf32>
    %9 = math.exp %8 : vector<16x128xf32>
    %cst_7 = arith.constant 1.000000e+00 : f32
    %10 = vector.broadcast %cst_7 : f32 to vector<16x128xf32>
    %11 = arith.addf %10, %9 : vector<16x128xf32>
    %12 = arith.divf %10, %11 : vector<16x128xf32>
    %13 = arith.mulf %5, %12 : vector<16x128xf32>
    %14 = arith.mulf %13, %7 : vector<16x128xf32>
    %c0_8 = arith.constant 0 : index
    %c0_9 = arith.constant 0 : index
    %15 = vector.load %arg7[%c0_8, %c0_9] : memref<16x128xf32, #tpu.memory_space<vmem>>, vector<16x128xf32>
    %c0_10 = arith.constant 0 : index
    %c0_11 = arith.constant 0 : index
    %16 = vector.load %arg5[%c0_10, %c0_11] : memref<128x128xf32, #tpu.memory_space<vmem>>, vector<128x128xf32>
    %cst_12 = arith.constant dense<0.000000e+00> : vector<16x128xf32>
    %17 = tpu.matmul %14, %16, %cst_12 {dimension_numbers = #tpu.dot_dimension_numbers<[1], [1], [0], [0], [0, 0, 1, 0], [], []>} : vector<16x128xf32>, vector<128x128xf32>, vector<16x128xf32> -> vector<16x128xf32>
    %18 = arith.addf %15, %17 : vector<16x128xf32>
    %c0_13 = arith.constant 0 : index
    %c0_14 = arith.constant 0 : index
    %19 = vector.load %arg7[%c0_13, %c0_14] : memref<16x128xf32, #tpu.memory_space<vmem>>, vector<16x128xf32>
    tpu.vector_store %arg7[%c0_13, %c0_14], %18 {strides = array<i32>} : memref<16x128xf32, #tpu.memory_space<vmem>>, vector<16x128xf32>,
    %c0_i32_15 = arith.constant 0 : i32
    %20 = arith.cmpi eq, %arg1, %c0_i32_15 : i32
    %21 = arith.extui %20 : i1 to i32
    %c0_i32_16 = arith.constant 0 : i32
    %22 = arith.cmpi ne, %21, %c0_i32_16 : i32
    scf.if %22 {
      %c0_17 = arith.constant 0 : index
      %c0_18 = arith.constant 0 : index
      %23 = vector.load %arg7[%c0_17, %c0_18] : memref<16x128xf32, #tpu.memory_space<vmem>>, vector<16x128xf32>
      %c0_19 = arith.constant 0 : index
      %c0_20 = arith.constant 0 : index
      %24 = vector.load %arg6[%c0_19, %c0_20] : memref<16x128xf32, #tpu.memory_space<vmem>>, vector<16x128xf32>
      tpu.vector_store %arg6[%c0_19, %c0_20], %23 {strides = array<i32>} : memref<16x128xf32, #tpu.memory_space<vmem>>, vector<16x128xf32>,
    } else {
    }
    return
  }
  func.func @transform_0(%arg0: i32, %arg1: i32) -> (i32, i32) {
    %c0_i32 = arith.constant 0 : i32
    %c0_i32_0 = arith.constant 0 : i32
    return %arg0, %c0_i32 : i32, i32
  }
  func.func @transform_1(%arg0: i32, %arg1: i32) -> (i32, i32) {
    %c0_i32 = arith.constant 0 : i32
    %c0_i32_0 = arith.constant 0 : i32
    return %arg1, %c0_i32 : i32, i32
  }
  func.func @transform_2(%arg0: i32, %arg1: i32) -> (i32, i32) {
    %c0_i32 = arith.constant 0 : i32
    %c0_i32_0 = arith.constant 0 : i32
    return %arg1, %c0_i32 : i32, i32
  }
  func.func @transform_3(%arg0: i32, %arg1: i32) -> (i32, i32) {
    %c0_i32 = arith.constant 0 : i32
    %c0_i32_0 = arith.constant 0 : i32
    return %c0_i32, %arg1 : i32, i32
  }
  func.func @transform_4(%arg0: i32, %arg1: i32) -> (i32, i32) {
    %c0_i32 = arith.constant 0 : i32
    %c0_i32_0 = arith.constant 0 : i32
    return %arg0, %c0_i32 : i32, i32
  }
}

</mosaic_0001>

<bundles_post_ra>
// kernel: tpu_custom_call.1
= control target key start
LH: loop header
LB: loop body
LE: loop exit
PB: predicated region body
PF: predicated region fallthrough
CT: control target
= control target key end

     0   :  { %9 = vsyncpa [#allocation4], 0  ;;  %s505_s0 = inlined_call_operand.hbm [shape: f32[16,128], index: 0, kind: input, shape index: {}]   ;;  %s506_s1 = inlined_call_operand.hbm [shape: f32[128,128], index: 1, kind: input, shape index: {}]   ;;  %s507_s2 = inlined_call_operand.hbm [shape: f32[128,128], index: 2, kind: input, shape index: {}]   ;;  %s508_s3 = inlined_call_operand.hbm [shape: f32[128,128], index: 3, kind: input, shape index: {}]   ;;  %s509_s4 = inlined_call_operand.hbm [shape: f32[16,128], index: 4, kind: output, shape index: {}]  }
   0x1   :  { %10 = vsyncpa [#allocation7], 0 }
   0x2   :  { %11 = vsyncpa [#allocation10], 0 }
   0x3   :  { %12 = vsyncpa [#allocation5], 0  ;;  %s30_s17 = sshll.u32 %s506_s1, 4  ;;  %s443_s18 = smov [#allocation6]   ;;  %s31_s17 = int_to_ptr.hbm [resolvable:$true] %s30_s17 }
   0x4   :  { %s32_s19 = sshll.u32 %s443_s18, 4  ;;  %s17_s22 = sshll.u32 %s505_s0, 4  ;;  %s33_s19 = int_to_ptr.vmem [resolvable:$true] %s32_s19  ;;  %s18_s22 = int_to_ptr.hbm [resolvable:$true] %s17_s22 }
   0x5   :  { %s444_s23 = smov 128   ;;  %s445_s24 = smov 8  }
   0x6   :  { %38 = dma.hbm_to_vmem [thread:$0]  %s31_s17, 2048, %s33_s19, [#allocation7], %s444_s23, %s444_s23, %s445_s24  }
   0x7   :  { %s446_s25 = smov [#allocation3]   ;;  %s43_s1 = sshll.u32 %s507_s2, 4  ;;  %s44_s1 = int_to_ptr.hbm [resolvable:$true] %s43_s1 }
   0x8   :  { %s19_s26 = sshll.u32 %s446_s25, 4  ;;  %s56_s30 = sshll.u32 %s508_s3, 4  ;;  %s20_s26 = int_to_ptr.vmem [resolvable:$true] %s19_s26  ;;  %s57_s30 = int_to_ptr.hbm [resolvable:$true] %s56_s30 }
   0x9   :  { %25 = dma.hbm_to_vmem [thread:$0]  %s18_s22, 256, %s20_s26, [#allocation4], %s444_s23, %s444_s23, %s445_s24  }
   0xa   :  { %s447_s5 = smov [#allocation8]   ;;  %s448_s7 = smov [#allocation9]  }
   0xb   :  { %s45_s6 = sshll.u32 %s447_s5, 4  ;;  %s58_s2 = sshll.u32 %s448_s7, 4  ;;  %s46_s6 = int_to_ptr.vmem [resolvable:$true] %s45_s6  ;;  %s59_s2 = int_to_ptr.vmem [resolvable:$true] %s58_s2 }
   0xc   :  { %51 = dma.hbm_to_vmem [thread:$0]  %s44_s1, 2048, %s46_s6, [#allocation7], %s444_s23, %s444_s23, %s445_s24  }
   0xd   :  { %64 = dma.hbm_to_vmem [thread:$0]  %s57_s30, 2048, %s59_s2, [#allocation10], %s444_s23, %s444_s23, %s445_s24  }
   0xe   :  { %435 = dma.done.wait [#allocation4], 256  }
   0xf   :  { %436 = vsyncadd [#allocation4], 4294967040 }
  0x10   :  { %437 = dma.done.wait [#allocation7], 4096  }
  0x11   :  { %438 = vsyncadd [#allocation7], 4294963200 }
  0x12   :  { %439 = dma.done.wait [#allocation10], 2048  }
  0x13   :  { %440 = vsyncadd [#allocation10], 4294965248  ;;  %v104_v0 = vld [vmem:[#allocation6 + $0x78] sm:$0xff]  ;;  %v103_v1 = vld [vmem:[#allocation6 + $0x70] sm:$0xff]  ;;  %s449_s3 = smov [#allocation11]   ;;  %s267_s11 = sshll.u32 %s509_s4, 4  ;;  %s268_s11 = int_to_ptr.hbm [resolvable:$true] %s267_s11 }
  0x14   :  { %105 = vmatpush.xpose.msra.mxu0 %v104_v0  ;;  %284 = vmatpush.xpose.msra.mxu3 %v104_v0  ;;  %v143_v2 = vld [vmem:[#allocation8 + $0x78] sm:$0xff]  ;;  %v142_v3 = vld [vmem:[#allocation8 + $0x70] sm:$0xff]  ;;  %v102_v4 = vld [vmem:[#allocation6 + $0x68] sm:$0xff]  ;;  %s265_s8 = sshll.u32 %s449_s3, 4  ;;  %s266_s8 = int_to_ptr.vmem [resolvable:$true] %s265_s8 }
  0x15   :  { %144 = vmatpush.xpose.msra.mxu1 %v143_v2  ;;  %v141_v5 = vld [vmem:[#allocation8 + $0x68] sm:$0xff]  ;;  %v101_v6 = vld [vmem:[#allocation6 + $0x60] sm:$0xff]  ;;  %v100_v8 = vld [vmem:[#allocation6 + $0x58] sm:$0xff] }
  0x16   :  { %v140_v7 = vld [vmem:[#allocation8 + $0x60] sm:$0xff]  ;;  %v139_v9 = vld [vmem:[#allocation8 + $0x58] sm:$0xff]  ;;  %v99_v10 = vld [vmem:[#allocation6 + $0x50] sm:$0xff] }
  0x17   :  { %v138_v11 = vld [vmem:[#allocation8 + $0x50] sm:$0xff]  ;;  %v98_v12 = vld [vmem:[#allocation6 + $0x48] sm:$0xff]  ;;  %v97_v14 = vld [vmem:[#allocation6 + $0x40] sm:$0xff] }
  0x18   :  { %106 = vmatpush.xpose.msra.mxu0 %v103_v1  ;;  %285 = vmatpush.xpose.msra.mxu3 %v103_v1  ;;  %v137_v13 = vld [vmem:[#allocation8 + $0x48] sm:$0xff]  ;;  %v136_v15 = vld [vmem:[#allocation8 + $0x40] sm:$0xff]  ;;  %v96_v16 = vld [vmem:[#allocation6 + $0x38] sm:$0xff] }
  0x19   :  { %145 = vmatpush.xpose.msra.mxu1 %v142_v3  ;;  %v135_v17 = vld [vmem:[#allocation8 + $0x38] sm:$0xff]  ;;  %v95_v18 = vld [vmem:[#allocation6 + $0x30] sm:$0xff]  ;;  %v94_v20 = vld [vmem:[#allocation6 + $0x28] sm:$0xff] }
  0x1a   :  { %v134_v19 = vld [vmem:[#allocation8 + $0x30] sm:$0xff]  ;;  %v133_v21 = vld [vmem:[#allocation8 + $0x28] sm:$0xff]  ;;  %v93_v22 = vld [vmem:[#allocation6 + $0x20] sm:$0xff] }
  0x1b   :  { %v226_v23 = vld [vmem:[#allocation9 + $0x78] sm:$0xff]  ;;  %v132_v24 = vld [vmem:[#allocation8 + $0x20] sm:$0xff]  ;;  %v225_v25 = vld [vmem:[#allocation9 + $0x70] sm:$0xff] }
  0x1c   :  { %107 = vmatpush.xpose.msra.mxu0 %v102_v4  ;;  %286 = vmatpush.xpose.msra.mxu3 %v102_v4  ;;  %v92_v26 = vld [vmem:[#allocation6 + $0x18] sm:$0xff]  ;;  %v224_v28 = vld [vmem:[#allocation9 + $0x68] sm:$0xff]  ;;  %v91_v29 = vld [vmem:[#allocation6 + $0x10] sm:$0xff] }
  0x1d   :  { %146 = vmatpush.xpose.msra.mxu1 %v141_v5  ;;  %227 = vmatpush.xpose.msra.mxu2 %v226_v23  ;;  %v131_v27 = vld [vmem:[#allocation8 + $0x18] sm:$0xff]  ;;  %v130_v30 = vld [vmem:[#allocation8 + $0x10] sm:$0xff]  ;;  %v223_v31 = vld [vmem:[#allocation9 + $0x60] sm:$0xff] }
  0x1e   :  { %v90_v32 = vld [vmem:[#allocation6 + $0x8] sm:$0xff]  ;;  %v222_v34 = vld [vmem:[#allocation9 + $0x58] sm:$0xff]  ;;  %v89_v35 = vld [vmem:[#allocation6] sm:$0xff] }
  0x1f   :  { %v129_v33 = vld [vmem:[#allocation8 + $0x8] sm:$0xff]  ;;  %v128_v36 = vld [vmem:[#allocation8] sm:$0xff]  ;;  %v221_v37 = vld [vmem:[#allocation9 + $0x50] sm:$0xff] }
  0x20   :  { %108 = vmatpush.xpose.msra.mxu0 %v101_v6  ;;  %287 = vmatpush.xpose.msra.mxu3 %v101_v6  ;;  %v87_v38 = vld [vmem:[#allocation3] sm:$0xff]  ;;  %v88_v39 = vld [vmem:[#allocation3 + $0x8] sm:$0xff]  ;;  %v220_v40 = vld [vmem:[#allocation9 + $0x48] sm:$0xff] }
  0x21   :  { %147 = vmatpush.xpose.msra.mxu1 %v140_v7  ;;  %228 = vmatpush.xpose.msra.mxu2 %v225_v25  ;;  %v219_v41 = vld [vmem:[#allocation9 + $0x40] sm:$0xff]  ;;  %v218_v42 = vld [vmem:[#allocation9 + $0x38] sm:$0xff]  ;;  %v217_v43 = vld [vmem:[#allocation9 + $0x30] sm:$0xff] }
  0x22   :  { %v216_v44 = vld [vmem:[#allocation9 + $0x28] sm:$0xff]  ;;  %v215_v45 = vld [vmem:[#allocation9 + $0x20] sm:$0xff]  ;;  %v214_v46 = vld [vmem:[#allocation9 + $0x18] sm:$0xff] }
  0x23   :  { %v213_v47 = vld [vmem:[#allocation9 + $0x10] sm:$0xff]  ;;  %v212_v48 = vld [vmem:[#allocation9 + $0x8] sm:$0xff]  ;;  %v211_v49 = vld [vmem:[#allocation9] sm:$0xff] }
  0x24   :  { %109 = vmatpush.xpose.msra.mxu0 %v100_v8  ;;  %288 = vmatpush.xpose.msra.mxu3 %v100_v8 }
  0x25   :  { %148 = vmatpush.xpose.msra.mxu1 %v139_v9  ;;  %229 = vmatpush.xpose.msra.mxu2 %v224_v28 }
  0x28   :  { %110 = vmatpush.xpose.msra.mxu0 %v99_v10  ;;  %289 = vmatpush.xpose.msra.mxu3 %v99_v10 }
  0x29   :  { %149 = vmatpush.xpose.msra.mxu1 %v138_v11  ;;  %230 = vmatpush.xpose.msra.mxu2 %v223_v31 }
  0x2c   :  { %111 = vmatpush.xpose.msra.mxu0 %v98_v12  ;;  %290 = vmatpush.xpose.msra.mxu3 %v98_v12 }
  0x2d   :  { %150 = vmatpush.xpose.msra.mxu1 %v137_v13  ;;  %231 = vmatpush.xpose.msra.mxu2 %v222_v34 }
  0x30   :  { %112 = vmatpush.xpose.msra.mxu0 %v97_v14  ;;  %291 = vmatpush.xpose.msra.mxu3 %v97_v14 }
  0x31   :  { %151 = vmatpush.xpose.msra.mxu1 %v136_v15  ;;  %232 = vmatpush.xpose.msra.mxu2 %v221_v37 }
  0x34   :  { %113 = vmatpush.xpose.msra.mxu0 %v96_v16  ;;  %292 = vmatpush.xpose.msra.mxu3 %v96_v16 }
  0x35   :  { %152 = vmatpush.xpose.msra.mxu1 %v135_v17  ;;  %233 = vmatpush.xpose.msra.mxu2 %v220_v40 }
  0x38   :  { %114 = vmatpush.xpose.msra.mxu0 %v95_v18  ;;  %293 = vmatpush.xpose.msra.mxu3 %v95_v18 }
  0x39   :  { %153 = vmatpush.xpose.msra.mxu1 %v134_v19  ;;  %234 = vmatpush.xpose.msra.mxu2 %v219_v41 }
  0x3c   :  { %115 = vmatpush.xpose.msra.mxu0 %v94_v20  ;;  %294 = vmatpush.xpose.msra.mxu3 %v94_v20 }
  0x3d   :  { %154 = vmatpush.xpose.msra.mxu1 %v133_v21  ;;  %235 = vmatpush.xpose.msra.mxu2 %v218_v42 }
  0x40   :  { %116 = vmatpush.xpose.msra.mxu0 %v93_v22  ;;  %295 = vmatpush.xpose.msra.mxu3 %v93_v22 }
  0x41   :  { %155 = vmatpush.xpose.msra.mxu1 %v132_v24  ;;  %236 = vmatpush.xpose.msra.mxu2 %v217_v43 }
  0x44   :  { %117 = vmatpush.xpose.msra.mxu0 %v92_v26  ;;  %296 = vmatpush.xpose.msra.mxu3 %v92_v26 }
  0x45   :  { %156 = vmatpush.xpose.msra.mxu1 %v131_v27  ;;  %237 = vmatpush.xpose.msra.mxu2 %v216_v44 }
  0x48   :  { %118 = vmatpush.xpose.msra.mxu0 %v91_v29  ;;  %297 = vmatpush.xpose.msra.mxu3 %v91_v29 }
  0x49   :  { %157 = vmatpush.xpose.msra.mxu1 %v130_v30  ;;  %238 = vmatpush.xpose.msra.mxu2 %v215_v45 }
  0x4c   :  { %119 = vmatpush.xpose.msra.mxu0 %v90_v32  ;;  %298 = vmatpush.xpose.msra.mxu3 %v90_v32 }
  0x4d   :  { %158 = vmatpush.xpose.msra.mxu1 %v129_v33  ;;  %239 = vmatpush.xpose.msra.mxu2 %v214_v46 }
  0x50   :  { %120 = vmatpush.xpose.msra.mxu0 %v89_v35  ;;  %299 = vmatpush.xpose.msra.mxu3 %v89_v35 }
  0x51   :  { %159 = vmatpush.xpose.msra.mxu1 %v128_v36  ;;  %240 = vmatpush.xpose.msra.mxu2 %v213_v47 }
  0x53   :  { %121 = vmatmul.f32.vlgmr.msra.gmra.mxu0 %v87_v38  ;;  %124 = vmatmul.f32.vlgmr.msra.gmra.mxu3 %v88_v39 }
  0x54   :  { %160 = vmatmul.f32.vlgmr.msra.gmra.mxu1 %v87_v38 }
  0x55   :  { %241 = vmatpush.xpose.msra.mxu2 %v212_v48 }
  0x59   :  { %242 = vmatpush.xpose.msra.mxu2 %v211_v49 }
  0x5c   :  { %163 = vmatmul.f32.gmra.mxu1 %v88_v39 }
  0xd0   :  { %v122_v50 = vpop.f32.mrf.mxu0 }
  0xd1   :  { %v282_v51 = vmul.f32 -1.442695, %v122_v50  ;;  %v161_v4 = vpop.f32.mrf.mxu1 }
  0xd3   :  { %307 = vpow2.f32 %v282_v51 }
  0xd6   :  { %v125_v52 = vpop.f32.mrf.mxu3 }
  0xd7   :  { %v283_v53 = vmul.f32 -1.442695, %v125_v52 }
  0xd9   :  { %v308_v54 = vpop.eup %307  ;;  %309 = vpow2.f32 %v283_v53  ;;  %v164_v18 = vpop.f32.mrf.mxu1 }
  0xda   :  { %v173_v55 = vadd.f32 1.0, %v308_v54 }
  0xdc   :  { %311 = vrcp.f32 %v173_v55  ;;  %v186_v61 = vand.u32 2147483648, %v173_v55  ;;  %v184_v63 = vand.u32 2147483647, %v173_v55  ;;  %vm180_vm1 = vweird.f32 %v173_v55 }
  0xde   :  { %v187_v3 = vor.u32 1.1754944e-38, %v186_v61  ;;  %vm185_vm3 = vcmp.eq.f32.partialorder %v184_v63, 8.507059e+37 }
  0xdf   :  { %v310_v56 = vpop.eup %309 }
  0xe0   :  { %v174_v57 = vadd.f32 1.0, %v310_v56 }
  0xe2   :  { %v312_v58 = vpop.eup %311  ;;  %313 = vrcp.f32 %v174_v57  ;;  %v201_v8 = vand.u32 2147483648, %v174_v57  ;;  %v199_v11 = vand.u32 2147483647, %v174_v57  ;;  %vm195_vm5 = vweird.f32 %v174_v57 }
  0xe3   :  { %v176_v59 = vmul.f32 %v312_v58, %v173_v55  ;;  %vm181_vm0 = vweird.f32 %v312_v58 }
  0xe4   :  { %vm182_vm2 = vmor %vm180_vm1, %vm181_vm0  ;;  %v202_v14 = vor.u32 1.1754944e-38, %v201_v8  ;;  %vm200_vm7 = vcmp.eq.f32.partialorder %v199_v11, 8.507059e+37 }
  0xe5   :  { %v177_v60 = vsub.f32 1.0, %v176_v59 }
  0xe7   :  { %v178_v62 = vmul.f32 %v312_v58, %v177_v60 }
  0xe8   :  { %v314_v0 = vpop.eup %313 }
  0xe9   :  { %v179_v1 = vadd.f32 %v312_v58, %v178_v62  ;;  %v191_v2 = vmul.f32 %v314_v0, %v174_v57  ;;  %vm196_vm4 = vweird.f32 %v314_v0 }
  0xea   :  { %vm197_vm6 = vmor %vm195_vm5, %vm196_vm4 }
  0xeb   :  { %v183_v5 = vsel %vm182_vm2, %v312_v58, %v179_v1  ;;  %v192_v6 = vsub.f32 1.0, %v191_v2 }
  0xec   :  { %v188_v7 = vsel %vm185_vm3, %v187_v3, %v183_v5 }
  0xed   :  { %v205_v9 = vmul.f32 %v188_v7, %v122_v50  ;;  %v193_v10 = vmul.f32 %v314_v0, %v192_v6 }
  0xef   :  { %v194_v12 = vadd.f32 %v314_v0, %v193_v10  ;;  %v207_v13 = vmul.f32 %v205_v9, %v161_v4 }
  0xf1   :  { %v198_v15 = vsel %vm197_vm6, %v314_v0, %v194_v12  ;;  %243 = vmatmul.f32.vlgmr.msra.gmra.mxu2 %v207_v13 }
  0xf2   :  { %v203_v16 = vsel %vm200_vm7, %v202_v14, %v198_v15 }
  0xf3   :  { %v206_v17 = vmul.f32 %v203_v16, %v125_v52 }
  0xf5   :  { %v208_v19 = vmul.f32 %v206_v17, %v164_v18 }
  0xf9   :  { %246 = vmatmul.f32.gmra.mxu2 %v208_v19 }
 0x174   :  { %v244_v20 = vpop.f32.mrf.mxu2 }
 0x175   :  { %259 = vst [vmem:[#allocation11] sm:$0xff] %v244_v20 }
 0x17c   :  { %v247_v21 = vpop.f32.mrf.mxu2 }
 0x17d   :  { %260 = vst [vmem:[#allocation11 + $0x8] sm:$0xff] %v247_v21 }
 0x17e   :  { %273 = dma.vmem_to_hbm [thread:$0]  %s266_s8, 256, %s268_s11, [#allocation5], %s444_s23, %s444_s23, %s445_s24  }
 0x17f   :  { %441 = dma.done.wait [#allocation5], 256  }
 0x180   :  { %442 = vsyncadd [#allocation5], 4294967040 }
 0x181   :  { %278 = vsyncpa [#allocation4], 1 }
 0x182   :  { %279 = vsyncpa [#allocation7], 1 }
 0x183   :  { %280 = vsyncpa [#allocation10], 1 }
 0x184   :  { %281 = vsyncpa [#allocation5], 1 }

</bundles_post_ra>
